<compile_context>
chip_gen: v5e
topology: v5e:2x2
jax: 0.10.0
libtpu: 0.0.40
codegen_flags: <defaults>
</compile_context>

<pallas_src>
import jax
import jax.numpy as jnp
from jax.experimental import pallas as pl
from jax.experimental.pallas import tpu as pltpu


def _round_up(x, m):
    return (x + m - 1) // m * m


def _two_mlp_head_kernel(x_ref, w6_ref, b6_ref, w7_ref, b7_ref, o_ref, acc_ref):
    k = pl.program_id(1)

    @pl.when(k == 0)
    def _init():
        # Seed the accumulator with the fc6 bias (removes the epilogue add).
        acc_ref[...] = jnp.broadcast_to(b6_ref[...], acc_ref.shape)

    # fc6 partial product for this K tile: cast the x tile to bf16 on the VPU
    # (hidden under the MXU), accumulate in f32.
    acc_ref[...] += jnp.dot(
        x_ref[...].astype(jnp.bfloat16),
        w6_ref[...],
        preferred_element_type=jnp.float32,
    )

    @pl.when(k == pl.num_programs(1) - 1)
    def _epilogue():
        # ReLU on the f32 accumulator (bias already folded in at init).
        h = jnp.maximum(acc_ref[...], 0.0)
        # fc7 (bf16 in, f32 accumulate) + bias + ReLU.
        y = jnp.dot(
            h.astype(w7_ref.dtype), w7_ref[...],
            preferred_element_type=jnp.float32,
        )
        o_ref[...] = jnp.maximum(y + b7_ref[...], 0.0).astype(o_ref.dtype)


def _pick_tm(n, tm_max=512):
    """Pick an M tile: as large as possible (fewer w6 re-reads), (8,)-aligned,
    preferring 256-aligned MXU-friendly sizes and avoiding row padding."""
    n8 = _round_up(n, 8)
    if n8 <= tm_max:
        return n8, n8
    for cand in (512, 384, 256, 128):
        if cand <= tm_max and n8 % cand == 0:
            return cand, n8
    return tm_max, _round_up(n8, tm_max)  # fallback: pad rows


def _pick_tk(in_feat, tk_max=2048):
    """Pick a K tile that divides in_features exactly (no K padding) when
    possible: the largest multiple of 128 that divides in_feat and is <= tk_max."""
    if in_feat <= tk_max:
        return in_feat, in_feat  # single full-K tile, no padding
    cand = (tk_max // 128) * 128
    while cand >= 128:
        if in_feat % cand == 0:
            return cand, in_feat
        cand -= 128
    return tk_max, _round_up(in_feat, tk_max)  # fallback: pad K


def prepare_params(w6, b6, w7, b7):
    """Cast MXU weight operands to bf16 once, at parameter-load time."""
    return (
        jnp.asarray(w6, jnp.bfloat16),
        jnp.asarray(b6, jnp.float32),
        jnp.asarray(w7, jnp.bfloat16),
        jnp.asarray(b7, jnp.float32),
    )


def two_mlp_head(x_nchw, w6, b6, w7, b7, *, tm_max=512, tk_max=2048):
    """Pallas implementation of TwoMLPHead.forward.

    x_nchw : (N, C, H, W)
    w6     : (in_features, representation_size)  [transposed vs. PyTorch]
    b6     : (representation_size,)
    w7     : (representation_size, representation_size)
    b7     : (representation_size,)
    returns: (N, representation_size) float32
    """
    n = x_nchw.shape[0]
    in_feat, rep = w6.shape

    # flatten(start_dim=1)
    x2d = x_nchw.reshape(n, -1)
    assert x2d.shape[1] == in_feat
    assert w7.shape == (rep, rep)

    tm, n_pad = _pick_tm(n, tm_max)
    tk, k_pad = _pick_tk(in_feat, tk_max)

    # x stays in its native dtype (bf16 cast happens per-tile in the kernel);
    # padding only in the fallback cases where the tile choice couldn't avoid it.
    if n_pad != n:
        x2d = jnp.pad(x2d, ((0, n_pad - n), (0, 0)))
    if k_pad != in_feat:
        x2d = jnp.pad(x2d, ((0, 0), (0, k_pad - in_feat)))

    # Weights: expected already bf16 (prepare_params); astype is a no-op then.
    w6_bf = w6.astype(jnp.bfloat16)
    if k_pad != in_feat:
        w6_bf = jnp.pad(w6_bf, ((0, k_pad - in_feat), (0, 0)))
    w7_bf = w7.astype(jnp.bfloat16)
    b6_2d = b6.astype(jnp.float32).reshape(1, rep)
    b7_2d = b7.astype(jnp.float32).reshape(1, rep)

    grid = (n_pad // tm, k_pad // tk)
    num_m_tiles = grid[0]
    xb = jnp.dtype(x2d.dtype).itemsize

    cost = pl.CostEstimate(
        flops=2 * n_pad * k_pad * rep + 2 * n_pad * rep * rep,
        transcendentals=0,
        bytes_accessed=(
            n_pad * k_pad * xb                # x, read once
            + num_m_tiles * k_pad * rep * 2   # w6 re-streamed once per M tile
            + rep * rep * 2                   # w7 (resident, read once)
            + 2 * rep * 4                     # biases
            + n_pad * rep * 4                 # f32 output
        ),
    )

    # VMEM footprint: double-buffered x/w6/out + resident w7/biases + f32 acc.
    vmem_bytes = (
        2 * tm * tk * xb
        + 2 * tk * rep * 2
        + 2 * rep * rep * 2
        + 2 * tm * rep * 4
        + tm * rep * 4
        + 4 * rep * 4
    )
    # Cap below v7x's 64 MiB physical VMEM; v5e/v6e (128 MiB) have headroom.
    vmem_limit = int(min(max(vmem_bytes * 5 // 4, 32 * 1024 * 1024),
                         56 * 1024 * 1024))

    out = pl.pallas_call(
        _two_mlp_head_kernel,
        out_shape=jax.ShapeDtypeStruct((n_pad, rep), jnp.float32),
        grid=grid,
        in_specs=[
            pl.BlockSpec((tm, tk), lambda i, k: (i, k)),     # x tile (streamed)
            pl.BlockSpec((tk, rep), lambda i, k: (k, 0)),    # w6 tile (streamed over K)
            pl.BlockSpec((1, rep), lambda i, k: (0, 0)),     # b6 (resident)
            pl.BlockSpec((rep, rep), lambda i, k: (0, 0)),   # w7 (resident)
            pl.BlockSpec((1, rep), lambda i, k: (0, 0)),     # b7 (resident)
        ],
        out_specs=pl.BlockSpec((tm, rep), lambda i, k: (i, 0)),
        scratch_shapes=[pltpu.VMEM((tm, rep), jnp.float32)],
        compiler_params=pltpu.CompilerParams(
            dimension_semantics=("parallel", "arbitrary"),
            vmem_limit_bytes=vmem_limit,
        ),
        cost_estimate=cost,
    )(x2d, w6_bf, b6_2d, w7_bf, b7_2d)

    return out[:n]


def _reference(x_nchw, w6, b6, w7, b7):
    # Same math as TwoMLPHead.forward, with bf16 MXU inputs / f32 accumulation
    # to mirror the kernel's precision.
    x = x_nchw.reshape(x_nchw.shape[0], -1).astype(jnp.bfloat16)
    h = jnp.dot(x, w6.astype(jnp.bfloat16), preferred_element_type=jnp.float32)
    h = jnp.maximum(h + b6, 0.0)
    y = jnp.dot(
        h.astype(jnp.bfloat16), w7.astype(jnp.bfloat16),
        preferred_element_type=jnp.float32,
    )
    return jnp.maximum(y + b7, 0.0)


if __name__ == "__main__":
    # Small shapes consistent with the module: ROI features (N, C, H, W).
    N, C, H, W = 8, 4, 4, 4          # in_features = C*H*W = 64
    REP = 128                        # representation_size

    key = jax.random.PRNGKey(0)
    kx, k6w, k6b, k7w, k7b = jax.random.split(key, 5)

    x = jax.random.normal(kx, (N, C, H, W), dtype=jnp.float32)
    # Synthetic parameters (PyTorch Linear weights pre-transposed to (in, out)).
    w6 = jax.random.normal(k6w, (C * H * W, REP), dtype=jnp.float32) * 0.05
    b6 = jax.random.normal(k6b, (REP,), dtype=jnp.float32) * 0.05
    w7 = jax.random.normal(k7w, (REP, REP), dtype=jnp.float32) * 0.05
    b7 = jax.random.normal(k7b, (REP,), dtype=jnp.float32) * 0.05

    # Cast MXU weights to bf16 once ("parameter-load time").
    w6_p, b6_p, w7_p, b7_p = prepare_params(w6, b6, w7, b7)

    out = jax.block_until_ready(two_mlp_head(x, w6_p, b6_p, w7_p, b7_p))
    ref = _reference(x, w6, b6, w7, b7)

    assert out.shape == (N, REP)
    assert jnp.allclose(out, ref, atol=2e-2, rtol=2e-2), "mismatch vs reference"

    print("KERNEL_OK")
</pallas_src>

<mosaic_0001>
module attributes {stable_mosaic.version = 11 : i64} {
  func.func @_two_mlp_head_kernel(%arg0: i32, %arg1: i32, %arg2: memref<8x64xf32, #tpu.memory_space<vmem>>, %arg3: memref<64x128xbf16, #tpu.memory_space<vmem>>, %arg4: memref<1x128xf32, #tpu.memory_space<vmem>>, %arg5: memref<128x128xbf16, #tpu.memory_space<vmem>>, %arg6: memref<1x128xf32, #tpu.memory_space<vmem>>, %arg7: memref<8x128xf32, #tpu.memory_space<vmem>>, %arg8: memref<8x128xf32, #tpu.memory_space<vmem>>) attributes {dimension_semantics = [#tpu.dimension_semantics<parallel>, #tpu.dimension_semantics<arbitrary>], iteration_bounds = array<i64: 1, 1>, scalar_prefetch = 0 : i64, scratch_operands = 1 : i64, tpu.core_type = #tpu.core_type<tc>, window_params = [{transform_indices = @transform_0, window_bounds = array<i64: 8, 64>}, {transform_indices = @transform_1, window_bounds = array<i64: 64, 128>}, {pipeline_mode = #tpu.pipeline_mode<synchronous>, transform_indices = @transform_2, window_bounds = array<i64: 1, 128>}, {pipeline_mode = #tpu.pipeline_mode<synchronous>, transform_indices = @transform_3, window_bounds = array<i64: 128, 128>}, {pipeline_mode = #tpu.pipeline_mode<synchronous>, transform_indices = @transform_4, window_bounds = array<i64: 1, 128>}, {transform_indices = @transform_5, window_bounds = array<i64: 8, 128>}]} {
    %c0_i32 = arith.constant 0 : i32
    %0 = arith.cmpi eq, %arg1, %c0_i32 : i32
    %1 = arith.extui %0 : i1 to i32
    %c0_i32_0 = arith.constant 0 : i32
    %2 = arith.cmpi ne, %1, %c0_i32_0 : i32
    scf.if %2 {
      %c0_10 = arith.constant 0 : index
      %c0_11 = arith.constant 0 : index
      %13 = vector.load %arg4[%c0_10, %c0_11] : memref<1x128xf32, #tpu.memory_space<vmem>>, vector<1x128xf32>
      %14 = vector.shape_cast %13 : vector<1x128xf32> to vector<1x128xf32>
      %15 = vector.broadcast %14 : vector<1x128xf32> to vector<8x128xf32>
      %c0_12 = arith.constant 0 : index
      %c0_13 = arith.constant 0 : index
      %16 = vector.load %arg8[%c0_12, %c0_13] : memref<8x128xf32, #tpu.memory_space<vmem>>, vector<8x128xf32>
      tpu.vector_store %arg8[%c0_12, %c0_13], %15 {strides = array<i32>} : memref<8x128xf32, #tpu.memory_space<vmem>>, vector<8x128xf32>,
    } else {
    }
    %c0 = arith.constant 0 : index
    %c0_1 = arith.constant 0 : index
    %3 = vector.load %arg8[%c0, %c0_1] : memref<8x128xf32, #tpu.memory_space<vmem>>, vector<8x128xf32>
    %c0_2 = arith.constant 0 : index
    %c0_3 = arith.constant 0 : index
    %4 = vector.load %arg2[%c0_2, %c0_3] : memref<8x64xf32, #tpu.memory_space<vmem>>, vector<8x64xf32>
    %5 = arith.truncf %4 : vector<8x64xf32> to vector<8x64xbf16>
    %c0_4 = arith.constant 0 : index
    %c0_5 = arith.constant 0 : index
    %6 = vector.load %arg3[%c0_4, %c0_5] : memref<64x128xbf16, #tpu.memory_space<vmem>>, vector<64x128xbf16>
    %cst = arith.constant dense<0.000000e+00> : vector<8x128xf32>
    %7 = tpu.matmul %5, %6, %cst {dimension_numbers = #tpu.dot_dimension_numbers<[1], [0], [0], [1], [0, 0, 1, 1], [], []>} : vector<8x64xbf16>, vector<64x128xbf16>, vector<8x128xf32> -> vector<8x128xf32>
    %8 = arith.addf %3, %7 : vector<8x128xf32>
    %c0_6 = arith.constant 0 : index
    %c0_7 = arith.constant 0 : index
    %9 = vector.load %arg8[%c0_6, %c0_7] : memref<8x128xf32, #tpu.memory_space<vmem>>, vector<8x128xf32>
    tpu.vector_store %arg8[%c0_6, %c0_7], %8 {strides = array<i32>} : memref<8x128xf32, #tpu.memory_space<vmem>>, vector<8x128xf32>,
    %c0_i32_8 = arith.constant 0 : i32
    %10 = arith.cmpi eq, %arg1, %c0_i32_8 : i32
    %11 = arith.extui %10 : i1 to i32
    %c0_i32_9 = arith.constant 0 : i32
    %12 = arith.cmpi ne, %11, %c0_i32_9 : i32
    scf.if %12 {
      %c0_10 = arith.constant 0 : index
      %c0_11 = arith.constant 0 : index
      %13 = vector.load %arg8[%c0_10, %c0_11] : memref<8x128xf32, #tpu.memory_space<vmem>>, vector<8x128xf32>
      %cst_12 = arith.constant 0.000000e+00 : f32
      %14 = vector.broadcast %cst_12 : f32 to vector<8x128xf32>
      %15 = arith.maximumf %13, %14 : vector<8x128xf32>
      %16 = arith.truncf %15 : vector<8x128xf32> to vector<8x128xbf16>
      %c0_13 = arith.constant 0 : index
      %c0_14 = arith.constant 0 : index
      %17 = vector.load %arg5[%c0_13, %c0_14] : memref<128x128xbf16, #tpu.memory_space<vmem>>, vector<128x128xbf16>
      %cst_15 = arith.constant dense<0.000000e+00> : vector<8x128xf32>
      %18 = tpu.matmul %16, %17, %cst_15 {dimension_numbers = #tpu.dot_dimension_numbers<[1], [0], [0], [1], [0, 0, 1, 1], [], []>} : vector<8x128xbf16>, vector<128x128xbf16>, vector<8x128xf32> -> vector<8x128xf32>
      %c0_16 = arith.constant 0 : index
      %c0_17 = arith.constant 0 : index
      %19 = vector.load %arg6[%c0_16, %c0_17] : memref<1x128xf32, #tpu.memory_space<vmem>>, vector<1x128xf32>
      %20 = vector.broadcast %19 : vector<1x128xf32> to vector<8x128xf32>
      %21 = arith.addf %18, %20 : vector<8x128xf32>
      %cst_18 = arith.constant 0.000000e+00 : f32
      %22 = vector.broadcast %cst_18 : f32 to vector<8x128xf32>
      %23 = arith.maximumf %21, %22 : vector<8x128xf32>
      %c0_19 = arith.constant 0 : index
      %c0_20 = arith.constant 0 : index
      %24 = vector.load %arg7[%c0_19, %c0_20] : memref<8x128xf32, #tpu.memory_space<vmem>>, vector<8x128xf32>
      tpu.vector_store %arg7[%c0_19, %c0_20], %23 {strides = array<i32>} : memref<8x128xf32, #tpu.memory_space<vmem>>, vector<8x128xf32>,
    } else {
    }
    return
  }
  func.func @transform_0(%arg0: i32, %arg1: i32) -> (i32, i32) {
    %c0_i32 = arith.constant 0 : i32
    return %arg0, %arg1 : i32, i32
  }
  func.func @transform_1(%arg0: i32, %arg1: i32) -> (i32, i32) {
    %c0_i32 = arith.constant 0 : i32
    %c0_i32_0 = arith.constant 0 : i32
    return %arg1, %c0_i32 : i32, i32
  }
  func.func @transform_2(%arg0: i32, %arg1: i32) -> (i32, i32) {
    %c0_i32 = arith.constant 0 : i32
    %c0_i32_0 = arith.constant 0 : i32
    %c0_i32_1 = arith.constant 0 : i32
    return %c0_i32, %c0_i32_0 : i32, i32
  }
  func.func @transform_3(%arg0: i32, %arg1: i32) -> (i32, i32) {
    %c0_i32 = arith.constant 0 : i32
    %c0_i32_0 = arith.constant 0 : i32
    %c0_i32_1 = arith.constant 0 : i32
    return %c0_i32, %c0_i32_0 : i32, i32
  }
  func.func @transform_4(%arg0: i32, %arg1: i32) -> (i32, i32) {
    %c0_i32 = arith.constant 0 : i32
    %c0_i32_0 = arith.constant 0 : i32
    %c0_i32_1 = arith.constant 0 : i32
    return %c0_i32, %c0_i32_0 : i32, i32
  }
  func.func @transform_5(%arg0: i32, %arg1: i32) -> (i32, i32) {
    %c0_i32 = arith.constant 0 : i32
    %c0_i32_0 = arith.constant 0 : i32
    return %arg0, %c0_i32 : i32, i32
  }
}

</mosaic_0001>

<bundles_post_ra>
// kernel: tpu_custom_call.1
= control target key start
LH: loop header
LB: loop body
LE: loop exit
PB: predicated region body
PF: predicated region fallthrough
CT: control target
= control target key end

     0   :  { %10 = vsyncpa [#allocation4], 0  ;;  %s462_s0 = inlined_call_operand.hbm [shape: f32[8,64], index: 0, kind: input, shape index: {}]   ;;  %s463_s1 = inlined_call_operand.hbm [shape: bf16[64,128], index: 1, kind: input, shape index: {}]   ;;  %s464_s2 = inlined_call_operand.vmem [shape: f32[1,128], index: 2, kind: input, shape index: {}]   ;;  %s465_s3 = inlined_call_operand.hbm [shape: bf16[128,128], index: 3, kind: input, shape index: {}]   ;;  %s466_s4 = inlined_call_operand.vmem [shape: f32[1,128], index: 4, kind: input, shape index: {}]   ;;  %s467_s5 = inlined_call_operand.hbm [shape: f32[8,128], index: 5, kind: output, shape index: {}]  }
   0x1   :  { %11 = vsyncpa [#allocation7], 0  ;;  %s28_s20 = sshll.u32 %s463_s1, 4  ;;  %s29_s20 = int_to_ptr.hbm [resolvable:$true] %s28_s20 }
   0x2   :  { %12 = vsyncpa [#allocation5], 0  ;;  %s408_s21 = smov [#allocation6]   ;;  %s18_s25 = sshll.u32 %s462_s0, 4  ;;  %s19_s25 = int_to_ptr.hbm [resolvable:$true] %s18_s25 }
   0x3   :  { %s30_s22 = sshll.u32 %s408_s21, 4  ;;  %s409_s26 = smov 64   ;;  %s31_s22 = int_to_ptr.vmem [resolvable:$true] %s30_s22 }
   0x4   :  { %s410_s27 = smov 4   ;;  %s411_s28 = smov [#allocation3]  }
   0x5   :  { %36 = dma.hbm_to_vmem [thread:$0]  %s29_s20, 512, %s31_s22, [#allocation7], %s409_s26, %s409_s26, %s410_s27  }
   0x6   :  { %s20_s29 = sshll.u32 %s411_s28, 4  ;;  %s43_s7 = sshll.u32 %s465_s3, 4  ;;  %s21_s29 = int_to_ptr.vmem [resolvable:$true] %s20_s29  ;;  %s44_s7 = int_to_ptr.hbm [resolvable:$true] %s43_s7 }
   0x7   :  { %23 = dma.hbm_to_vmem [thread:$0]  %s19_s25, 128, %s21_s29, [#allocation4]  }
   0x8   :  { %s412_s1 = smov [#allocation8]  }
   0x9   :  { %s45_s8 = sshll.u32 %s412_s1, 4  ;;  %s46_s8 = int_to_ptr.vmem [resolvable:$true] %s45_s8 }
   0xa   :  { %51 = dma.hbm_to_vmem [thread:$0]  %s44_s7, 1024, %s46_s8, [#allocation7], %s409_s26, %s409_s26, %s410_s27  }
   0xb   :  { %402 = dma.done.wait [#allocation4], 128  }
   0xc   :  { %403 = vsyncadd [#allocation4], 4294967168 }
   0xd   :  { %404 = dma.done.wait [#allocation7], 1536  }
   0xe   :  { %405 = vsyncadd [#allocation7], 4294965760  ;;  %v289_v0 = vld [vmem:[#allocation6 + $0x18] sm:$0xff]  ;;  %v288_v2 = vld [vmem:[#allocation6 + $0x10] sm:$0xff]  ;;  %vm111_vm0 = vcmask 523264   ;;  %s413_s11 = smov [#allocation9]  }
   0xf   :  { %v297_v1 = vld [vmem:[#allocation8 + $0x38] sm:$0xff]  ;;  %119 = vmatpush.bf16.msra.mxu0 %v289_v0  ;;  %v296_v3 = vld [vmem:[#allocation8 + $0x30] sm:$0xff]  ;;  %v287_v4 = vld [vmem:[#allocation6 + $0x8] sm:$0xff]  ;;  %s224_s12 = sshll.u32 %s413_s11, 4  ;;  %s226_s15 = sshll.u32 %s467_s5, 4  ;;  %s225_s12 = int_to_ptr.vmem [resolvable:$true] %s224_s12  ;;  %s227_s15 = int_to_ptr.hbm [resolvable:$true] %s226_s15 }
  0x10   :  { %204 = vmatpush.bf16.msra.mxu1 %v297_v1  ;;  %v295_v5 = vld [vmem:[#allocation8 + $0x28] sm:$0xff]  ;;  %v286_v6 = vld [vmem:[#allocation6] sm:$0xff]  ;;  %v77_v7 = vld [vmem:[#allocation3] sm:$0xff] }
  0x11   :  { %v294_v8 = vld [vmem:[#allocation8 + $0x20] sm:$0xff]  ;;  %v78_v9 = vpack.c.bf16 %v77_v7, %v77_v7  ;;  %v293_v10 = vld [vmem:[#allocation8 + $0x18] sm:$0xff]  ;;  %v292_v11 = vld [vmem:[#allocation8 + $0x10] sm:$0xff] }
  0x12   :  { %v291_v12 = vld [vmem:[#allocation8 + $0x8] sm:$0xff]  ;;  %v290_v13 = vld [vmem:[#allocation8] sm:$0xff]  ;;  %v304_v14 = vld [vmem:[%s464_s2] ss:$0 sm:$0xff] }
  0x13   :  { %120 = vmatpush.bf16.msra.mxu0 %v288_v2  ;;  %v305_v20 = vld [vmem:[%s466_s4] ss:$0 sm:$0xff] }
  0x14   :  { %205 = vmatpush.bf16.msra.mxu1 %v296_v3 }
  0x17   :  { %121 = vmatpush.bf16.msra.mxu0 %v287_v4 }
  0x18   :  { %206 = vmatpush.bf16.msra.mxu1 %v295_v5 }
  0x1b   :  { %122 = vmatpush.bf16.msra.mxu0 %v286_v6 }
  0x1c   :  { %207 = vmatpush.bf16.msra.mxu1 %v294_v8 }
  0x1e   :  { %253 = vmatmul.msk.bf16.vlgmr.msra.gmra.mxu0 %vm111_vm0, %v78_v9 }
  0x20   :  { %208 = vmatpush.bf16.msra.mxu1 %v293_v10 }
  0x24   :  { %209 = vmatpush.bf16.msra.mxu1 %v292_v11 }
  0x28   :  { %210 = vmatpush.bf16.msra.mxu1 %v291_v12 }
  0x2c   :  { %211 = vmatpush.bf16.msra.mxu1 %v290_v13 }
  0x9b   :  { %v124_v15 = vpop.f32.mrf.mxu0 }
  0x9c   :  { %v128_v16 = vadd.f32 %v304_v14, %v124_v15 }
  0x9e   :  { %v134_v17 = vmax.f32 %v128_v16, 0.0 }
  0xa0   :  { %v135_v18 = vpack.c.bf16 %v134_v17, %v134_v17 }
  0xa2   :  { %212 = vmatmul.bf16.vlgmr.msra.gmra.mxu1 %v135_v18 }
  0xa3   :  { %v126_v19 = vpop.f32.mrf.mxu0 }
 0x11f   :  { %v213_v21 = vpop.f32.mrf.mxu1 }
 0x120   :  { %v214_v22 = vadd.f32 %v305_v20, %v213_v21 }
 0x122   :  { %v217_v23 = vmax.f32 %v214_v22, 0.0 }
 0x124   :  { %218 = vst [vmem:[#allocation9] sm:$0xff] %v217_v23 }
 0x125   :  { %229 = dma.vmem_to_hbm [thread:$0]  %s225_s12, 128, %s227_s15, [#allocation5]  }
 0x127   :  { %v215_v24 = vpop.f32.mrf.mxu1 }
 0x128   :  { %406 = dma.done.wait [#allocation5], 128  }
 0x129   :  { %407 = vsyncadd [#allocation5], 4294967168 }
 0x12a   :  { %234 = vsyncpa [#allocation4], 1 }
 0x12b   :  { %235 = vsyncpa [#allocation7], 1 }
 0x12c   :  { %236 = vsyncpa [#allocation5], 1 }

</bundles_post_ra>
